<compile_context>
chip_gen: v5e
topology: v5e:2x2
jax: 0.10.0
libtpu: 0.0.40
codegen_flags: <defaults>
</compile_context>

<pallas_src>
import functools

import jax
import jax.numpy as jnp
from jax.experimental import pallas as pl
from jax.experimental.pallas import tpu as pltpu


def _encoder_kernel(x_ref, w1_ref, b1_ref, w2_ref, b2_ref, w3_ref, b3_ref, o_ref):
    # x_ref: (TB, 256) f32; weights bf16 (in, out); biases f32 (1, out); o_ref: (TB, feat) f32.
    x = x_ref[...].astype(jnp.bfloat16)  # f32 -> bf16 on the VPU; hides under the input DMA.

    # Layer 1: Linear(256 -> 128) on the MXU (bf16 x bf16 -> f32 accumulate); bias + ReLU in f32.
    h1 = jnp.dot(x, w1_ref[...], preferred_element_type=jnp.float32)
    h1 = jnp.maximum(h1 + b1_ref[...], 0.0)

    # Layer 2: Linear(128 -> 32) + ReLU.
    h2 = jnp.dot(h1.astype(jnp.bfloat16), w2_ref[...], preferred_element_type=jnp.float32)
    h2 = jnp.maximum(h2 + b2_ref[...], 0.0)

    # Layer 3: Linear(32 -> feature_size), no activation.
    h3 = jnp.dot(h2.astype(jnp.bfloat16), w3_ref[...], preferred_element_type=jnp.float32)
    o_ref[...] = (h3 + b3_ref[...]).astype(o_ref.dtype)


def _round_up(n, m):
    return ((n + m - 1) // m) * m


def prepare_params(params):
    """One-time conversion: bf16 weights (MXU operands), f32 biases (VPU epilogue)."""
    return {
        "w1": params["w1"].astype(jnp.bfloat16),
        "w2": params["w2"].astype(jnp.bfloat16),
        "w3": params["w3"].astype(jnp.bfloat16),
        "b1": params["b1"].astype(jnp.float32),
        "b2": params["b2"].astype(jnp.float32),
        "b3": params["b3"].astype(jnp.float32),
    }


@functools.partial(jax.jit, static_argnames=("block_rows",))
def encoder_forward(x, prepared, *, block_rows=2048):
    """x: (B, W*H) float32. prepared: output of prepare_params (bf16 w*, f32 (1,out) b*)."""
    w1, w2, w3 = prepared["w1"], prepared["w2"], prepared["w3"]
    b1, b2, b3 = prepared["b1"], prepared["b2"], prepared["b3"]

    B, D = x.shape
    feat = w3.shape[1]

    # Sublane-align the requested tile (guards e.g. block_rows=500 against the (8,128) rule).
    block_rows = max(8, (block_rows // 8) * 8)

    # Batch tile: multiple of 8, capped by block_rows, and capped at ~B/2 so the grid keeps
    # >= 2 steps whenever B > 8 (both v7x TensorCores stay fed via the "parallel" batch axis).
    tb_target = _round_up(pl.cdiv(B, 2), 8) if B > 8 else 8
    TB = max(8, min(block_rows, tb_target))

    grid = (pl.cdiv(B, TB),)  # no padding: Pallas masks the partial last block's output writes.

    const = lambda i: (0, 0)   # weights / biases: single block, VMEM-resident across all steps
    batch = lambda i: (i, 0)   # x / out: stream over the batch

    x = x.astype(jnp.float32)

    return pl.pallas_call(
        _encoder_kernel,
        out_shape=jax.ShapeDtypeStruct((B, feat), jnp.float32),
        grid=grid,
        in_specs=[
            pl.BlockSpec((TB, D), batch),
            pl.BlockSpec(w1.shape, const), pl.BlockSpec(b1.shape, const),
            pl.BlockSpec(w2.shape, const), pl.BlockSpec(b2.shape, const),
            pl.BlockSpec(w3.shape, const), pl.BlockSpec(b3.shape, const),
        ],
        # feat=8 output stays lane-sparse: contiguous, tiny vs. the (B,256) input stream, and
        # its stores hide under the input DMA.
        out_specs=pl.BlockSpec((TB, feat), batch),
        compiler_params=pltpu.CompilerParams(
            dimension_semantics=("parallel",),   # megacore-shard the batch axis on v7x
        ),
    )(x, w1, b1, w2, b2, w3, b3)


def init_params(key, W=16, H=16, feature_size=8):
    """Deterministic init mimicking torch.nn.Linear's uniform(-1/sqrt(fan_in), 1/sqrt(fan_in))."""
    dims = [(W * H, 128), (128, 32), (32, feature_size)]
    params = {}
    for i, (fan_in, fan_out) in enumerate(dims, start=1):
        key, kw, kb = jax.random.split(key, 3)
        bound = 1.0 / jnp.sqrt(fan_in)
        params[f"w{i}"] = jax.random.uniform(
            kw, (fan_in, fan_out), jnp.float32, minval=-bound, maxval=bound)
        params[f"b{i}"] = jax.random.uniform(
            kb, (1, fan_out), jnp.float32, minval=-bound, maxval=bound)
    return params


def encoder_reference(x, prepared):
    """Pure-JAX reference with the same bf16 operand rounding (f32 accumulation).

    NOTE: bf16 rounding of x / weights / inter-layer activations deviates from the pure-f32
    PyTorch Encoder by ~1e-3 relative error; this reference matches the kernel's numerics.
    """
    bf = lambda a: a.astype(jnp.bfloat16).astype(jnp.float32)
    h = jnp.maximum(bf(x) @ bf(prepared["w1"]) + prepared["b1"], 0.0)
    h = jnp.maximum(bf(h) @ bf(prepared["w2"]) + prepared["b2"], 0.0)
    return bf(h) @ bf(prepared["w3"]) + prepared["b3"]


if __name__ == "__main__":
    key = jax.random.PRNGKey(0)
    k_param, k_x, k_x2 = jax.random.split(key, 3)

    W, H, feature_size = 16, 16, 8
    batch = 2

    params = init_params(k_param, W=W, H=H, feature_size=feature_size)
    prepared = prepare_params(params)   # bf16 weight cast hoisted out of the jitted forward

    # (B, W, H) image -> flattened (B, W*H), exactly as the torch module's nn.Linear expects.
    x_img = jax.random.normal(k_x, (batch, W, H), dtype=jnp.float32)
    x = x_img.reshape(batch, W * H)

    out = jax.block_until_ready(encoder_forward(x, prepared))
    ref = encoder_reference(x, prepared)
    assert out.shape == (batch, feature_size), out.shape
    assert jnp.allclose(out, ref, atol=1e-3, rtol=1e-3), "mismatch vs reference (B=2)"

    # Exercise the multi-tile pipelined path: B not a multiple of TB, grid >= 2, masked last block.
    big_b = 1030
    x_big = jax.random.normal(k_x2, (big_b, W * H), dtype=jnp.float32)
    out_big = jax.block_until_ready(encoder_forward(x_big, prepared))
    ref_big = encoder_reference(x_big, prepared)
    assert out_big.shape == (big_b, feature_size), out_big.shape
    assert jnp.allclose(out_big, ref_big, atol=1e-3, rtol=1e-3), "mismatch vs reference (B=1030)"

    print("KERNEL_OK")
</pallas_src>

<mosaic_0001>
module attributes {stable_mosaic.version = 11 : i64} {
  func.func @_encoder_kernel(%arg0: i32, %arg1: memref<8x256xf32, #tpu.memory_space<vmem>>, %arg2: memref<256x128xbf16, #tpu.memory_space<vmem>>, %arg3: memref<1x128xf32, #tpu.memory_space<vmem>>, %arg4: memref<128x32xbf16, #tpu.memory_space<vmem>>, %arg5: memref<1x32xf32, #tpu.memory_space<vmem>>, %arg6: memref<32x8xbf16, #tpu.memory_space<vmem>>, %arg7: memref<1x8xf32, #tpu.memory_space<vmem>>, %arg8: memref<8x8xf32, #tpu.memory_space<vmem>>) attributes {dimension_semantics = [#tpu.dimension_semantics<parallel>], iteration_bounds = array<i64: 1>, scalar_prefetch = 0 : i64, scratch_operands = 0 : i64, tpu.core_type = #tpu.core_type<tc>, window_params = [{transform_indices = @transform_0, window_bounds = array<i64: 8, 256>}, {pipeline_mode = #tpu.pipeline_mode<synchronous>, transform_indices = @transform_1, window_bounds = array<i64: 256, 128>}, {pipeline_mode = #tpu.pipeline_mode<synchronous>, transform_indices = @transform_2, window_bounds = array<i64: 1, 128>}, {pipeline_mode = #tpu.pipeline_mode<synchronous>, transform_indices = @transform_3, window_bounds = array<i64: 128, 32>}, {pipeline_mode = #tpu.pipeline_mode<synchronous>, transform_indices = @transform_4, window_bounds = array<i64: 1, 32>}, {pipeline_mode = #tpu.pipeline_mode<synchronous>, transform_indices = @transform_5, window_bounds = array<i64: 32, 8>}, {pipeline_mode = #tpu.pipeline_mode<synchronous>, transform_indices = @transform_6, window_bounds = array<i64: 1, 8>}, {transform_indices = @transform_7, window_bounds = array<i64: 8, 8>}]} {
    %c0 = arith.constant 0 : index
    %c0_0 = arith.constant 0 : index
    %0 = vector.load %arg1[%c0, %c0_0] : memref<8x256xf32, #tpu.memory_space<vmem>>, vector<8x256xf32>
    %1 = arith.truncf %0 : vector<8x256xf32> to vector<8x256xbf16>
    %c0_1 = arith.constant 0 : index
    %c0_2 = arith.constant 0 : index
    %2 = vector.load %arg2[%c0_1, %c0_2] : memref<256x128xbf16, #tpu.memory_space<vmem>>, vector<256x128xbf16>
    %cst = arith.constant dense<0.000000e+00> : vector<8x128xf32>
    %3 = tpu.matmul %1, %2, %cst {dimension_numbers = #tpu.dot_dimension_numbers<[1], [0], [0], [1], [0, 0, 1, 1], [], []>} : vector<8x256xbf16>, vector<256x128xbf16>, vector<8x128xf32> -> vector<8x128xf32>
    %c0_3 = arith.constant 0 : index
    %c0_4 = arith.constant 0 : index
    %4 = vector.load %arg3[%c0_3, %c0_4] : memref<1x128xf32, #tpu.memory_space<vmem>>, vector<1x128xf32>
    %5 = vector.broadcast %4 : vector<1x128xf32> to vector<8x128xf32>
    %6 = arith.addf %3, %5 : vector<8x128xf32>
    %cst_5 = arith.constant 0.000000e+00 : f32
    %7 = vector.broadcast %cst_5 : f32 to vector<8x128xf32>
    %8 = arith.maximumf %6, %7 : vector<8x128xf32>
    %9 = arith.truncf %8 : vector<8x128xf32> to vector<8x128xbf16>
    %c0_6 = arith.constant 0 : index
    %c0_7 = arith.constant 0 : index
    %10 = vector.load %arg4[%c0_6, %c0_7] : memref<128x32xbf16, #tpu.memory_space<vmem>>, vector<128x32xbf16>
    %cst_8 = arith.constant dense<0.000000e+00> : vector<8x32xf32>
    %11 = tpu.matmul %9, %10, %cst_8 {dimension_numbers = #tpu.dot_dimension_numbers<[1], [0], [0], [1], [0, 0, 1, 1], [], []>} : vector<8x128xbf16>, vector<128x32xbf16>, vector<8x32xf32> -> vector<8x32xf32>
    %c0_9 = arith.constant 0 : index
    %c0_10 = arith.constant 0 : index
    %12 = vector.load %arg5[%c0_9, %c0_10] : memref<1x32xf32, #tpu.memory_space<vmem>>, vector<1x32xf32>
    %13 = vector.broadcast %12 : vector<1x32xf32> to vector<8x32xf32>
    %14 = arith.addf %11, %13 : vector<8x32xf32>
    %cst_11 = arith.constant 0.000000e+00 : f32
    %15 = vector.broadcast %cst_11 : f32 to vector<8x32xf32>
    %16 = arith.maximumf %14, %15 : vector<8x32xf32>
    %17 = arith.truncf %16 : vector<8x32xf32> to vector<8x32xbf16>
    %c0_12 = arith.constant 0 : index
    %c0_13 = arith.constant 0 : index
    %18 = vector.load %arg6[%c0_12, %c0_13] : memref<32x8xbf16, #tpu.memory_space<vmem>>, vector<32x8xbf16>
    %cst_14 = arith.constant dense<0.000000e+00> : vector<8x8xf32>
    %19 = tpu.matmul %17, %18, %cst_14 {dimension_numbers = #tpu.dot_dimension_numbers<[1], [0], [0], [1], [0, 0, 1, 1], [], []>} : vector<8x32xbf16>, vector<32x8xbf16>, vector<8x8xf32> -> vector<8x8xf32>
    %c0_15 = arith.constant 0 : index
    %c0_16 = arith.constant 0 : index
    %20 = vector.load %arg7[%c0_15, %c0_16] : memref<1x8xf32, #tpu.memory_space<vmem>>, vector<1x8xf32>
    %21 = vector.broadcast %20 : vector<1x8xf32> to vector<8x8xf32>
    %22 = arith.addf %19, %21 : vector<8x8xf32>
    %c0_17 = arith.constant 0 : index
    %c0_18 = arith.constant 0 : index
    %23 = vector.load %arg8[%c0_17, %c0_18] : memref<8x8xf32, #tpu.memory_space<vmem>>, vector<8x8xf32>
    tpu.vector_store %arg8[%c0_17, %c0_18], %22 {strides = array<i32>} : memref<8x8xf32, #tpu.memory_space<vmem>>, vector<8x8xf32>,
    return
  }
  func.func @transform_0(%arg0: i32) -> (i32, i32) {
    %c0_i32 = arith.constant 0 : i32
    %c0_i32_0 = arith.constant 0 : i32
    return %arg0, %c0_i32 : i32, i32
  }
  func.func @transform_1(%arg0: i32) -> (i32, i32) {
    %c0_i32 = arith.constant 0 : i32
    %c0_i32_0 = arith.constant 0 : i32
    %c0_i32_1 = arith.constant 0 : i32
    return %c0_i32, %c0_i32_0 : i32, i32
  }
  func.func @transform_2(%arg0: i32) -> (i32, i32) {
    %c0_i32 = arith.constant 0 : i32
    %c0_i32_0 = arith.constant 0 : i32
    %c0_i32_1 = arith.constant 0 : i32
    return %c0_i32, %c0_i32_0 : i32, i32
  }
  func.func @transform_3(%arg0: i32) -> (i32, i32) {
    %c0_i32 = arith.constant 0 : i32
    %c0_i32_0 = arith.constant 0 : i32
    %c0_i32_1 = arith.constant 0 : i32
    return %c0_i32, %c0_i32_0 : i32, i32
  }
  func.func @transform_4(%arg0: i32) -> (i32, i32) {
    %c0_i32 = arith.constant 0 : i32
    %c0_i32_0 = arith.constant 0 : i32
    %c0_i32_1 = arith.constant 0 : i32
    return %c0_i32, %c0_i32_0 : i32, i32
  }
  func.func @transform_5(%arg0: i32) -> (i32, i32) {
    %c0_i32 = arith.constant 0 : i32
    %c0_i32_0 = arith.constant 0 : i32
    %c0_i32_1 = arith.constant 0 : i32
    return %c0_i32, %c0_i32_0 : i32, i32
  }
  func.func @transform_6(%arg0: i32) -> (i32, i32) {
    %c0_i32 = arith.constant 0 : i32
    %c0_i32_0 = arith.constant 0 : i32
    %c0_i32_1 = arith.constant 0 : i32
    return %c0_i32, %c0_i32_0 : i32, i32
  }
  func.func @transform_7(%arg0: i32) -> (i32, i32) {
    %c0_i32 = arith.constant 0 : i32
    %c0_i32_0 = arith.constant 0 : i32
    return %arg0, %c0_i32 : i32, i32
  }
}

</mosaic_0001>

<bundles_post_ra>
// kernel: encoder_forward.1
= control target key start
LH: loop header
LB: loop body
LE: loop exit
PB: predicated region body
PF: predicated region fallthrough
CT: control target
= control target key end

     0   :  { %12 = vsyncpa [#allocation3], 0  ;;  %s661_s0 = inlined_call_operand.vmem [shape: f32[2,256], index: 0, kind: input, shape index: {}]   ;;  %s662_s1 = inlined_call_operand.hbm [shape: bf16[256,128], index: 1, kind: input, shape index: {}]   ;;  %s663_s2 = inlined_call_operand.vmem [shape: f32[1,128], index: 2, kind: input, shape index: {}]   ;;  %s664_s3 = inlined_call_operand.vmem [shape: bf16[128,32], index: 3, kind: input, shape index: {}]   ;;  %s665_s4 = inlined_call_operand.vmem [shape: f32[1,32], index: 4, kind: input, shape index: {}]   ;;  %s666_s5 = inlined_call_operand.vmem [shape: bf16[32,8], index: 5, kind: input, shape index: {}]   ;;  %s667_s6 = inlined_call_operand.vmem [shape: f32[1,8], index: 6, kind: input, shape index: {}]   ;;  %s668_s7 = inlined_call_operand.hbm [shape: f32[2,8], index: 7, kind: output, shape index: {}]  }
   0x1   :  { %13 = vsyncpa [#allocation4], 0  ;;  %s20_s26 = sshll.u32 %s662_s1, 4  ;;  %s558_s27 = smov [#allocation2]   ;;  %s21_s26 = int_to_ptr.hbm [resolvable:$true] %s20_s26 }
   0x2   :  { %s22_s28 = sshll.u32 %s558_s27, 4  ;;  %s559_s29 = smov 64   ;;  %s23_s28 = int_to_ptr.vmem [resolvable:$true] %s22_s28 }
   0x3   :  { %s560_s30 = smov 4  }
   0x4   :  { %28 = dma.hbm_to_vmem [thread:$0]  %s21_s26, 2048, %s23_s28, [#allocation3], %s559_s29, %s559_s29, %s560_s30  }
   0x5   :  { %554 = dma.done.wait [#allocation3], 2048  }
   0x6   :  { %555 = vsyncadd [#allocation3], 4294965248  ;;  %v478_v0 = vld [vmem:[#allocation2 + $0x38] sm:$0xff]  ;;  %v477_v2 = vld [vmem:[#allocation2 + $0x30] sm:$0xff]  ;;  %vm328_vm0 = vcmask 261120   ;;  %vm345_vm1 = vcmask 64512  }
   0x7   :  { %v486_v1 = vld [vmem:[#allocation2 + $0x78] sm:$0xff]  ;;  %197 = vmatpush.bf16.msra.mxu0 %v478_v0  ;;  %v485_v3 = vld [vmem:[#allocation2 + $0x70] sm:$0xff]  ;;  %v476_v4 = vld [vmem:[#allocation2 + $0x28] sm:$0xff] }
   0x8   :  { %210 = vmatpush.bf16.msra.mxu1 %v486_v1  ;;  %v484_v5 = vld [vmem:[#allocation2 + $0x68] sm:$0xff]  ;;  %v44_v6 = vld [vmem:[%s661_s0] sm:$0xf]  ;;  %v45_v7 = vld [vmem:[%s661_s0 + $0x4] sm:$0xf] }
   0x9   :  { %v46_v8 = vld [vmem:[%s661_s0 + $0x8] sm:$0xf]  ;;  %v47_v9 = vld [vmem:[%s661_s0 + $0xc] sm:$0xf]  ;;  %52 = vst [vmem:[#allocation1] ss:$4 sm:$0xff] %v44_v6 }
   0xa   :  { %54 = vst [vmem:[#allocation1 + $0x1] ss:$4 sm:$0xff] %v45_v7  ;;  %v494_v10 = vld [vmem:[%s664_s3 + $0x38] sm:$0xff]  ;;  %v475_v11 = vld [vmem:[#allocation2 + $0x20] sm:$0xff]  ;;  %v493_v12 = vld [vmem:[%s664_s3 + $0x30] sm:$0xff] }
   0xb   :  { %198 = vmatpush.bf16.msra.mxu0 %v477_v2  ;;  %56 = vst [vmem:[#allocation1 + $0x2] ss:$4 sm:$0xff] %v46_v8  ;;  %293 = vmatpush.bf16.msra.mxu2 %v494_v10  ;;  %v483_v13 = vld [vmem:[#allocation2 + $0x60] sm:$0xff]  ;;  %v474_v15 = vld [vmem:[#allocation2 + $0x18] sm:$0xff]  ;;  %v473_v18 = vld [vmem:[#allocation2 + $0x10] sm:$0xff] }
   0xc   :  { %211 = vmatpush.bf16.msra.mxu1 %v485_v3  ;;  %58 = vst [vmem:[#allocation1 + $0x3] ss:$4 sm:$0xff] %v47_v9  ;;  %v492_v14 = vld [vmem:[%s664_s3 + $0x28] sm:$0xff]  ;;  %v482_v16 = vld [vmem:[#allocation2 + $0x58] sm:$0xff]  ;;  %v481_v19 = vld [vmem:[#allocation2 + $0x50] sm:$0xff] }
   0xd   :  { %v491_v17 = vld [vmem:[%s664_s3 + $0x20] sm:$0xff]  ;;  %v490_v20 = vld [vmem:[%s664_s3 + $0x18] sm:$0xff]  ;;  %v472_v21 = vld [vmem:[#allocation2 + $0x8] sm:$0xff] }
   0xe   :  { %v480_v22 = vld [vmem:[#allocation2 + $0x48] sm:$0xff]  ;;  %v471_v23 = vld [vmem:[#allocation2] sm:$0xff]  ;;  %v487_v31 = vld [vmem:[%s664_s3] sm:$0xff] }
   0xf   :  { %199 = vmatpush.bf16.msra.mxu0 %v476_v4  ;;  %294 = vmatpush.bf16.msra.mxu2 %v493_v12  ;;  %v479_v24 = vld [vmem:[#allocation2 + $0x40] sm:$0xff]  ;;  %v489_v25 = vld [vmem:[%s664_s3 + $0x10] sm:$0xff]  ;;  %v503_v32 = vld [vmem:[%s663_s2] ss:$0 sm:$0xff] }
  0x10   :  { %212 = vmatpush.bf16.msra.mxu1 %v484_v5  ;;  %v488_v30 = vld [vmem:[%s664_s3 + $0x8] sm:$0xff]  ;;  %v495_v42 = vld [vmem:[%s666_s5] sm:$0xff] }
  0x11   :  { %v496_v41 = vld [vmem:[%s666_s5 + $0x8] sm:$0xff]  ;;  %v504_v43 = vld [vmem:[%s665_s4] ss:$0 sm:$0xff] }
  0x12   :  { %338 = vmatpush.bf16.msra.mxu3 %v496_v41  ;;  %v505_v49 = vld [vmem:[%s667_s6] ss:$0 sm:$0xff] }
  0x13   :  { %200 = vmatpush.bf16.msra.mxu0 %v475_v11  ;;  %295 = vmatpush.bf16.msra.mxu2 %v492_v14  ;;  %v59_v26 = vld.sshfl [vmem:[#allocation1] sm:$0xff pattern:$0x73625140]  ;;  %v60_v27 = vld.sshfl [vmem:[#allocation1 + $0x8] sm:$0xff pattern:$0x73625140] }
  0x14   :  { %213 = vmatpush.bf16.msra.mxu1 %v483_v13  ;;  %v63_v28 = vpack.c.bf16 %v59_v26, %v59_v26  ;;  %v64_v29 = vpack.c.bf16 %v60_v27, %v60_v27 }
  0x16   :  { %339 = vmatpush.bf16.msra.mxu3 %v495_v42 }
  0x17   :  { %201 = vmatpush.bf16.msra.mxu0 %v474_v15  ;;  %296 = vmatpush.bf16.msra.mxu2 %v491_v17 }
  0x18   :  { %214 = vmatpush.bf16.msra.mxu1 %v482_v16 }
  0x1b   :  { %202 = vmatpush.bf16.msra.mxu0 %v473_v18  ;;  %297 = vmatpush.bf16.msra.mxu2 %v490_v20 }
  0x1c   :  { %215 = vmatpush.bf16.msra.mxu1 %v481_v19 }
  0x1f   :  { %203 = vmatpush.bf16.msra.mxu0 %v472_v21  ;;  %298 = vmatpush.bf16.msra.mxu2 %v489_v25 }
  0x20   :  { %216 = vmatpush.bf16.msra.mxu1 %v480_v22 }
  0x23   :  { %204 = vmatpush.bf16.msra.mxu0 %v471_v23  ;;  %299 = vmatpush.bf16.msra.mxu2 %v488_v30 }
  0x24   :  { %217 = vmatpush.bf16.msra.mxu1 %v479_v24 }
  0x26   :  { %205 = vmatmul.bf16.vlgmr.msra.gmra.mxu0 %v63_v28 }
  0x27   :  { %218 = vmatmul.bf16.vlgmr.msra.gmra.mxu1 %v64_v29  ;;  %300 = vmatpush.bf16.msra.mxu2 %v487_v31 }
  0xa3   :  { %v206_v33 = vpop.f32.mrf.mxu0 }
  0xa4   :  { %v219_v34 = vpop.f32.mrf.mxu1  ;;  %v207_v35 = vadd.f32 %v503_v32, %v206_v33 }
  0xa6   :  { %v220_v36 = vadd.f32 %v219_v34, %v207_v35 }
  0xa8   :  { %v223_v37 = vmax.f32 %v220_v36, 0.0 }
  0xaa   :  { %v224_v38 = vpack.c.bf16 %v223_v37, %v223_v37 }
  0xab   :  { %v208_v39 = vpop.f32.mrf.mxu0 }
  0xac   :  { %v221_v40 = vpop.f32.mrf.mxu1  ;;  %301 = vmatmul.bf16.vlgmr.msra.gmra.mxu2 %v224_v38 }
 0x12f   :  { %v302_v44 = vpop.f32.mrf.mxu2 }
 0x130   :  { %v303_v45 = vadd.f32 %v504_v43, %v302_v44 }
 0x132   :  { %v306_v46 = vmax.f32 %v303_v45, 0.0 }
 0x134   :  { %v307_v47 = vpack.c.bf16 %v306_v46, %v306_v46 }
 0x136   :  { %470 = vmatmul.msk.bf16.vlgmr.msra.gmra.mxu3 %vm328_vm0, %v307_v47 }
 0x137   :  { %v304_v48 = vpop.f32.mrf.mxu2 }
 0x1b9   :  { %v341_v50 = vpop.f32.mrf.mxu3 }
 0x1ba   :  { %v342_v51 = vadd.f32 %v505_v49, %v341_v50 }
 0x1bc   :  { %346 = vst.msk [vmem:[#allocation5] sm:$0xff] %vm345_vm1, %v342_v51 }
 0x1c1   :  { %v343_v52 = vpop.f32.mrf.mxu3 }
 0x1c2   :  { %350 = vsyncadd [#allocation4], 96  ;;  %s353_s4 = sshll.u32 %s668_s7, 4  ;;  %s561_s15 = smov [#allocation5]   ;;  %s354_s4 = int_to_ptr.hbm [resolvable:$true] %s353_s4 }
 0x1c3   :  { %s351_s16 = sshll.u32 %s561_s15, 4  ;;  %s562_s17 = smov 32   ;;  %s352_s16 = int_to_ptr.vmem [resolvable:$true] %s351_s16 }
 0x1c4   :  { %s563_s18 = smov 2  }
 0x1c5   :  { %359 = dma.vmem_to_hbm [thread:$0]  %s352_s16, 32, %s354_s4, [#allocation4], %s562_s17, %s562_s17, %s563_s18  }
 0x1c6   :  { %556 = dma.done.wait [#allocation4], 128  }
 0x1c7   :  { %557 = vsyncadd [#allocation4], 4294967168 }
 0x1c8   :  { %364 = vsyncpa [#allocation3], 1 }
 0x1c9   :  { %365 = vsyncpa [#allocation4], 1 }

</bundles_post_ra>
